<compile_context>
chip_gen: v6e
topology: v6e:2x2x1
jax: 0.10.0
libtpu: 0.0.40
codegen_flags: <defaults>
</compile_context>

<pallas_src>
import functools
import numpy as np
import jax
import jax.numpy as jnp
from jax import lax
from jax.experimental import pallas as pl
from jax.experimental.pallas import tpu as pltpu


# ---------------------------------------------------------------------------
# Mesh construction glue (stands in for gendr.Mesh.from_obj("sphere_*.obj"))
# ---------------------------------------------------------------------------
def make_uv_sphere(n_stacks=8, n_slices=12):
    verts = [[0.0, 0.0, 1.0]]
    for i in range(1, n_stacks):
        phi = np.pi * i / n_stacks
        for j in range(n_slices):
            theta = 2.0 * np.pi * j / n_slices
            verts.append([np.sin(phi) * np.cos(theta),
                          np.sin(phi) * np.sin(theta),
                          np.cos(phi)])
    verts.append([0.0, 0.0, -1.0])
    faces = []
    for j in range(n_slices):
        faces.append([0, 1 + j, 1 + (j + 1) % n_slices])
    for i in range(n_stacks - 2):
        for j in range(n_slices):
            a = 1 + i * n_slices + j
            b = 1 + i * n_slices + (j + 1) % n_slices
            c = 1 + (i + 1) * n_slices + j
            d = 1 + (i + 1) * n_slices + (j + 1) % n_slices
            faces.append([a, c, b])
            faces.append([b, c, d])
    last = len(verts) - 1
    base = 1 + (n_stacks - 2) * n_slices
    for j in range(n_slices):
        faces.append([last, base + (j + 1) % n_slices, base + j])
    verts = np.asarray(verts, np.float64)
    # Small deterministic rotation so no coordinate is exactly 0/±1.
    ax, ay = 0.3, 0.2
    Rx = np.array([[1, 0, 0],
                   [0, np.cos(ax), -np.sin(ax)],
                   [0, np.sin(ax), np.cos(ax)]])
    Ry = np.array([[np.cos(ay), 0, np.sin(ay)],
                   [0, 1, 0],
                   [-np.sin(ay), 0, np.cos(ay)]])
    verts = verts @ Rx.T @ Ry.T
    return verts.astype(np.float32), np.asarray(faces, np.int32)


def build_laplacian(nv, faces):
    # Uniform graph Laplacian, row-normalized (SoftRas LaplacianLoss.__init__).
    lap = np.zeros((nv, nv), np.float32)
    f0, f1, f2 = faces[:, 0], faces[:, 1], faces[:, 2]
    lap[f0, f1] = -1.0
    lap[f1, f0] = -1.0
    lap[f1, f2] = -1.0
    lap[f2, f1] = -1.0
    lap[f2, f0] = -1.0
    lap[f0, f2] = -1.0
    r, c = np.diag_indices(nv)
    lap[r, c] = -lap.sum(1)
    for i in range(nv):
        lap[i, :] /= lap[i, i]
    return lap


def build_flatten_indices(faces):
    # SoftRas FlattenLoss.__init__: for every shared edge (v0,v1) find the two
    # opposite vertices v2, v3 of the adjacent triangles.
    edges = np.sort(np.concatenate((faces[:, 0:2], faces[:, 1:3]), axis=0), axis=1)
    edges = sorted(set(tuple(int(x) for x in e) for e in edges))
    v0s = np.array([e[0] for e in edges], np.int32)
    v1s = np.array([e[1] for e in edges], np.int32)
    v2s, v3s = [], []
    for v0, v1 in zip(v0s, v1s):
        count = 0
        for face in faces:
            if v0 in face and v1 in face:
                v = np.copy(face)
                v = v[v != v0]
                v = v[v != v1]
                if count == 0:
                    v2s.append(int(v[0]))
                    count += 1
                else:
                    v3s.append(int(v[0]))
    return v0s, v1s, np.asarray(v2s, np.int32), np.asarray(v3s, np.int32)


def round_up(x, m):
    return ((x + m - 1) // m) * m


# ---------------------------------------------------------------------------
# Fused Pallas kernel: vertex transform + Laplacian loss + flatten loss
# ---------------------------------------------------------------------------
def _fused_kernel(v_ref, d_ref, c_ref, lapT_ref, eidx_ref,
                  vout_ref, lap_ref, flat_ref,
                  *, n_pad, e_tile, n_verts, n_edges):
    eps = 1e-6
    j = pl.program_id(0)

    # ---- step 0 only: vertex transform + Laplacian loss ---------------------
    @pl.when(j == 0)
    def _():
        v = v_ref[...]                       # (8, n_pad); rows 0..2 = xyz
        d = d_ref[...]                       # (8, n_pad)
        centroid = jnp.tanh(c_ref[...])      # (8, 1); lane-broadcast

        # sigmoid(log(|v|/(1-|v|)) + d) == |v| / (|v| + (1-|v|)*exp(-d))
        # (valid for |v| < 1, which holds for the 0.5-scaled template).
        # Exact divide here: vertex positions are a model output.
        absv = jnp.abs(v)
        sig = absv / (absv + (1.0 - absv) * jnp.exp(-d))
        # relu(x)*(1-c) - relu(-x)*(1+c) + c  with x = sig*sign(v), sig >= 0:
        # single select on the sign of the template vertex.
        vt = jnp.where(v >= 0.0, sig * (1.0 - centroid),
                       -sig * (1.0 + centroid)) + centroid
        # Zero the padded vertex lanes so nothing downstream ever sees the
        # broadcast centroid on padding.
        lane_valid = lax.broadcasted_iota(jnp.int32, (8, n_pad), 1) < n_verts
        vt = jnp.where(lane_valid, vt, 0.0)
        vout_ref[...] = vt                   # lane-dense, unmasked store

        # Laplacian loss: sum((L @ V)**2);  vt @ L^T == (L @ V)^T.
        # TODO(synk): at sphere_1352 scale replace the dense L^T (O(N^2)) with
        # a fixed-degree neighbor-sum gather (same iota/index trick).
        y = jnp.dot(vt, lapT_ref[...], preferred_element_type=jnp.float32)
        lap_ref[0, 0] = jnp.sum(y * y)
        flat_ref[0, 0] = 0.0                 # init flatten-loss accumulator

    # ---- every step: flatten loss over one lane-dense tile of edges ---------
    vt = vout_ref[...]                       # resident (written at step 0)
    idx = eidx_ref[...]                      # (8, e_tile) int32; rows 0..3 = v0..v3
    iota_v = lax.broadcasted_iota(jnp.int32, (n_pad, e_tile), 0)

    def onehot(k):
        return jnp.where(iota_v == idx[k:k + 1, :], 1.0, 0.0)

    oh0 = onehot(0)
    # Only endpoint differences are needed -> 3 MXU passes instead of 4 gathers.
    a = jnp.dot(vt, onehot(1) - oh0, preferred_element_type=jnp.float32)   # v1s-v0s
    b1 = jnp.dot(vt, onehot(2) - oh0, preferred_element_type=jnp.float32)  # v2s-v0s
    b2 = jnp.dot(vt, onehot(3) - oh0, preferred_element_type=jnp.float32)  # v3s-v0s

    al2 = jnp.sum(a * a, axis=0, keepdims=True)          # (1, e_tile)
    inv_al1 = lax.rsqrt(al2 + eps)                        # reused by both branches
    inv_al2 = inv_al1 * inv_al1                           # 1/(al2+eps)

    def branch(b):
        bl2 = jnp.sum(b * b, axis=0, keepdims=True)
        inv_bl1 = lax.rsqrt(bl2 + eps)
        bl1 = (bl2 + eps) * inv_bl1                       # = sqrt(bl2 + eps)
        ab = jnp.sum(a * b, axis=0, keepdims=True)
        cos = ab * inv_al1 * inv_bl1
        sin = jnp.sqrt(jnp.maximum(1.0 - cos * cos, 0.0))
        cb = b - a * (ab * inv_al2)
        return cb, bl1 * sin

    cb1, cb1l1 = branch(b1)
    cb2, cb2l1 = branch(b2)
    # approx reciprocal only on a loss denominator (not on vertex outputs)
    cos = (jnp.sum(cb1 * cb2, axis=0, keepdims=True)
           * pl.reciprocal(cb1l1 * cb2l1 + eps, approx=True))
    loss = (cos + 1.0) ** 2
    gidx = lax.broadcasted_iota(jnp.int32, (1, e_tile), 1) + j * e_tile
    loss = jnp.where(gidx < n_edges, loss, 0.0)
    # .mean() over edges, accumulated across grid steps in SMEM.
    flat_ref[0, 0] = flat_ref[0, 0] + jnp.sum(loss) * (1.0 / n_edges)


def fused_vertex_losses(vT, dT, c81, lapT, eidx, *,
                        n_pad, e_pad, e_tile, n_verts, n_edges):
    num_tiles = e_pad // e_tile
    kernel = functools.partial(_fused_kernel, n_pad=n_pad, e_tile=e_tile,
                               n_verts=n_verts, n_edges=n_edges)
    grid_spec = pltpu.PrefetchScalarGridSpec(
        num_scalar_prefetch=0,
        grid=(num_tiles,),                                  # edge tiles (pipelined)
        in_specs=[
            pl.BlockSpec((8, n_pad), lambda j: (0, 0)),     # template V^T (resident)
            pl.BlockSpec((8, n_pad), lambda j: (0, 0)),     # displace^T   (resident)
            pl.BlockSpec((8, 1), lambda j: (0, 0)),         # center       (resident)
            pl.BlockSpec((n_pad, n_pad), lambda j: (0, 0)), # L^T          (resident)
            pl.BlockSpec((8, e_tile), lambda j: (0, j)),    # edge indices (streamed)
        ],
        out_specs=[
            pl.BlockSpec((8, n_pad), lambda j: (0, 0)),     # transformed V^T
            pl.BlockSpec((1, 1), lambda j: (0, 0),
                         memory_space=pltpu.MemorySpace.SMEM),   # laplacian loss
            pl.BlockSpec((1, 1), lambda j: (0, 0),
                         memory_space=pltpu.MemorySpace.SMEM),   # flatten loss
        ],
    )
    # NOTE(scale): at sphere_1352 (n_pad=1408) pick e_tile from the per-chip
    # VMEM budget (iota/one-hot intermediates are n_pad*e_tile f32) and set
    # pltpu.CompilerParams(vmem_limit_bytes=...) explicitly; on v7x a leading
    # "parallel" axis over edge tiles with partial losses would use both TCs.
    return pl.pallas_call(
        kernel,
        out_shape=[
            jax.ShapeDtypeStruct((8, n_pad), jnp.float32),
            jax.ShapeDtypeStruct((1, 1), jnp.float32),
            jax.ShapeDtypeStruct((1, 1), jnp.float32),
        ],
        grid_spec=grid_spec,
        compiler_params=pltpu.CompilerParams(
            dimension_semantics=("arbitrary",)),            # loss accumulation axis
    )(vT, dT, c81, lapT, eidx)


# ---------------------------------------------------------------------------
# Forward pass (mirrors Model.forward); packed layouts are built once outside.
# ---------------------------------------------------------------------------
def model_forward(batch_size, n_verts, n_pad, e_pad, e_tile, n_edges,
                  faces, vT, dT, c81, lapT, eidx):
    vtT, lap_loss, flat_loss = fused_vertex_losses(
        vT, dT, c81, lapT, eidx,
        n_pad=n_pad, e_pad=e_pad, e_tile=e_tile,
        n_verts=n_verts, n_edges=n_edges)

    # (N, 3) view only to materialize the module's (B, N, 3) return value.
    vt = vtT[:3, :n_verts].T

    # gendr.Mesh(vertices.repeat(B,1,1), faces.repeat(B,1,1)) -> return arrays.
    # TODO(synk): gendr.Mesh wrapper object / textures buffer not reproduced;
    # returning the batched (vertices, faces) arrays it would hold.
    verts_b = jnp.tile(vt[None], (batch_size, 1, 1))
    faces_b = jnp.tile(faces, (batch_size, 1, 1))
    return verts_b, faces_b, lap_loss[0, 0], flat_loss[0, 0]


# ---------------------------------------------------------------------------
# Pure-JAX reference (exact torch formulation) for a correctness check.
# ---------------------------------------------------------------------------
def reference_forward(verts05, displace, center, lap, v0s, v1s, v2s, v3s):
    eps = 1e-6
    v = verts05[0]
    centroid = jnp.tanh(center[0, 0])
    base = jnp.log(jnp.abs(v) / (1.0 - jnp.abs(v)))
    x = jax.nn.sigmoid(base + displace[0]) * jnp.sign(v)
    x = jnp.maximum(x, 0.0) * (1.0 - centroid) - jnp.maximum(-x, 0.0) * (centroid + 1.0)
    x = x + centroid
    lap_loss = jnp.sum((lap @ x) ** 2)
    p0, p1, p2, p3 = x[v0s], x[v1s], x[v2s], x[v3s]
    a1, b1, b2 = p1 - p0, p2 - p0, p3 - p0
    a1l2 = jnp.sum(a1 * a1, -1)

    def br(b):
        bl2 = jnp.sum(b * b, -1)
        al1 = jnp.sqrt(a1l2 + eps)
        bl1 = jnp.sqrt(bl2 + eps)
        ab = jnp.sum(a1 * b, -1)
        cos = ab / (al1 * bl1 + eps)
        sin = jnp.sqrt(jnp.maximum(1.0 - cos ** 2, 0.0))
        cb = b - a1 * (ab / (a1l2 + eps))[:, None]
        return cb, bl1 * sin

    cb1, cb1l1 = br(b1)
    cb2, cb2l1 = br(b2)
    cos = jnp.sum(cb1 * cb2, -1) / (cb1l1 * cb2l1 + eps)
    flat_loss = jnp.mean((cos + 1.0) ** 2)
    return x, lap_loss, flat_loss


if __name__ == "__main__":
    # Small sphere instead of sphere_1352.obj: 86 vertices, 168 faces, 252 edges.
    verts_np, faces_np = make_uv_sphere(n_stacks=8, n_slices=12)
    n_verts = verts_np.shape[0]
    n_faces = faces_np.shape[0]

    lap_np = build_laplacian(n_verts, faces_np)
    v0s_np, v1s_np, v2s_np, v3s_np = build_flatten_indices(faces_np)
    n_edges = int(v0s_np.shape[0])

    e_tile = 128                                  # toy grid = 2 edge tiles
    n_pad = max(128, round_up(n_verts, 128))
    e_pad = max(e_tile, round_up(n_edges, e_tile))

    verts05_np = verts_np * 0.5                   # module buffer: template * 0.5

    # Parameters (module inits them to zeros); use small deterministic values
    # so the sigmoid/tanh/sign path is actually exercised.
    key = jax.random.PRNGKey(0)
    k1, k2 = jax.random.split(key)
    displace = 0.05 * jax.random.normal(k1, (1, n_verts, 3), jnp.float32)
    center = 0.1 * jax.random.normal(k2, (1, 1, 3), jnp.float32)

    # Persistent packed layouts, built ONCE (hoisted out of the per-call forward;
    # in a real module these would be the stored buffer/parameter layout).
    vT_np = np.zeros((8, n_pad), np.float32)
    vT_np[:3, :n_verts] = verts05_np.T
    dT_np = np.zeros((8, n_pad), np.float32)
    dT_np[:3, :n_verts] = np.asarray(displace[0]).T
    c81_np = np.zeros((8, 1), np.float32)
    c81_np[:3, 0] = np.asarray(center).reshape(3)
    lapT_np = np.zeros((n_pad, n_pad), np.float32)
    lapT_np[:n_verts, :n_verts] = lap_np.T
    eidx_np = np.zeros((8, e_pad), np.int32)
    for k, idxs in enumerate((v0s_np, v1s_np, v2s_np, v3s_np)):
        eidx_np[k, :n_edges] = idxs

    vT = jnp.asarray(vT_np)
    dT = jnp.asarray(dT_np)
    c81 = jnp.asarray(c81_np)
    lapT = jnp.asarray(lapT_np)
    eidx = jnp.asarray(eidx_np)
    faces = jnp.asarray(faces_np)[None]

    batch_size = 2
    fwd = jax.jit(model_forward, static_argnums=(0, 1, 2, 3, 4, 5))
    verts_b, faces_b, lap_loss, flat_loss = fwd(
        batch_size, n_verts, n_pad, e_pad, e_tile, n_edges,
        faces, vT, dT, c81, lapT, eidx)
    jax.block_until_ready((verts_b, faces_b, lap_loss, flat_loss))

    # Correctness check against the exact torch-style reference.
    x_ref, lap_ref_val, flat_ref_val = reference_forward(
        jnp.asarray(verts05_np)[None], displace, center, jnp.asarray(lap_np),
        jnp.asarray(v0s_np), jnp.asarray(v1s_np),
        jnp.asarray(v2s_np), jnp.asarray(v3s_np))
    np.testing.assert_allclose(np.asarray(verts_b[0]), np.asarray(x_ref),
                               rtol=1e-3, atol=1e-5)
    np.testing.assert_allclose(float(lap_loss), float(lap_ref_val),
                               rtol=1e-3, atol=1e-6)
    np.testing.assert_allclose(float(flat_loss), float(flat_ref_val),
                               rtol=2e-2, atol=1e-5)

    assert verts_b.shape == (batch_size, n_verts, 3)
    assert faces_b.shape == (batch_size, n_faces, 3)
    assert np.isfinite(np.asarray(verts_b)).all()
    assert np.isfinite(float(lap_loss)) and np.isfinite(float(flat_loss))
    print("KERNEL_OK")
</pallas_src>

<mosaic_0001>
module attributes {stable_mosaic.version = 11 : i64} {
  func.func @_fused_kernel(%arg0: i32, %arg1: memref<8x128xf32, #tpu.memory_space<vmem>>, %arg2: memref<8x128xf32, #tpu.memory_space<vmem>>, %arg3: memref<8x1xf32, #tpu.memory_space<vmem>>, %arg4: memref<128x128xf32, #tpu.memory_space<vmem>>, %arg5: memref<8x128xi32, #tpu.memory_space<vmem>>, %arg6: memref<8x128xf32, #tpu.memory_space<vmem>>, %arg7: memref<1x1xf32, #tpu.memory_space<smem>>, %arg8: memref<1x1xf32, #tpu.memory_space<smem>>) attributes {dimension_semantics = [#tpu.dimension_semantics<arbitrary>], iteration_bounds = array<i64: 2>, scalar_prefetch = 0 : i64, scratch_operands = 0 : i64, tpu.core_type = #tpu.core_type<tc>, window_params = [{pipeline_mode = #tpu.pipeline_mode<synchronous>, transform_indices = @transform_0, window_bounds = array<i64: 8, 128>}, {pipeline_mode = #tpu.pipeline_mode<synchronous>, transform_indices = @transform_1, window_bounds = array<i64: 8, 128>}, {pipeline_mode = #tpu.pipeline_mode<synchronous>, transform_indices = @transform_2, window_bounds = array<i64: 8, 1>}, {pipeline_mode = #tpu.pipeline_mode<synchronous>, transform_indices = @transform_3, window_bounds = array<i64: 128, 128>}, {transform_indices = @transform_4, window_bounds = array<i64: 8, 128>}, {pipeline_mode = #tpu.pipeline_mode<synchronous>, transform_indices = @transform_5, window_bounds = array<i64: 8, 128>}, {transform_indices = @transform_6, window_bounds = array<i64: 1, 1>}, {transform_indices = @transform_7, window_bounds = array<i64: 1, 1>}]} {
    %c0_i32 = arith.constant 0 : i32
    %0 = arith.cmpi eq, %arg0, %c0_i32 : i32
    %1 = arith.extui %0 : i1 to i32
    %c0_i32_0 = arith.constant 0 : i32
    %2 = arith.cmpi ne, %1, %c0_i32_0 : i32
    scf.if %2 {
      %c0_38 = arith.constant 0 : index
      %c0_39 = arith.constant 0 : index
      %120 = vector.load %arg1[%c0_38, %c0_39] : memref<8x128xf32, #tpu.memory_space<vmem>>, vector<8x128xf32>
      %c0_40 = arith.constant 0 : index
      %c0_41 = arith.constant 0 : index
      %121 = vector.load %arg2[%c0_40, %c0_41] : memref<8x128xf32, #tpu.memory_space<vmem>>, vector<8x128xf32>
      %c0_42 = arith.constant 0 : index
      %c0_43 = arith.constant 0 : index
      %122 = vector.load %arg3[%c0_42, %c0_43] : memref<8x1xf32, #tpu.memory_space<vmem>>, vector<8x1xf32>
      %123 = math.tanh %122 : vector<8x1xf32>
      %124 = math.absf %120 : vector<8x128xf32>
      %cst_44 = arith.constant 1.000000e+00 : f32
      %125 = vector.broadcast %cst_44 : f32 to vector<8x128xf32>
      %126 = arith.subf %125, %124 : vector<8x128xf32>
      %cst_45 = arith.constant 0.000000e+00 : f32
      %127 = vector.broadcast %cst_45 : f32 to vector<8x128xf32>
      %128 = arith.subf %127, %121 : vector<8x128xf32>
      %129 = math.exp %128 : vector<8x128xf32>
      %130 = arith.mulf %126, %129 : vector<8x128xf32>
      %131 = arith.addf %124, %130 : vector<8x128xf32>
      %132 = arith.divf %124, %131 : vector<8x128xf32>
      %cst_46 = arith.constant 0.000000e+00 : f32
      %133 = vector.broadcast %cst_46 : f32 to vector<8x128xf32>
      %134 = arith.cmpf oge, %120, %133 : vector<8x128xf32>
      %cst_47 = arith.constant 1.000000e+00 : f32
      %135 = vector.broadcast %cst_47 : f32 to vector<8x1xf32>
      %136 = arith.subf %135, %123 : vector<8x1xf32>
      %137 = vector.broadcast %136 : vector<8x1xf32> to vector<8x128xf32>
      %138 = arith.mulf %132, %137 : vector<8x128xf32>
      %cst_48 = arith.constant 0.000000e+00 : f32
      %139 = vector.broadcast %cst_48 : f32 to vector<8x128xf32>
      %140 = arith.subf %139, %132 : vector<8x128xf32>
      %cst_49 = arith.constant 1.000000e+00 : f32
      %141 = vector.broadcast %cst_49 : f32 to vector<8x1xf32>
      %142 = arith.addf %141, %123 : vector<8x1xf32>
      %143 = vector.broadcast %142 : vector<8x1xf32> to vector<8x128xf32>
      %144 = arith.mulf %140, %143 : vector<8x128xf32>
      %145 = arith.select %134, %138, %144 : vector<8x128xi1>, vector<8x128xf32>
      %146 = vector.broadcast %123 : vector<8x1xf32> to vector<8x128xf32>
      %147 = arith.addf %145, %146 : vector<8x128xf32>
      %148 = tpu.iota {dimensions = array<i32: 1>} : vector<8x128xi32>
      %c86_i32 = arith.constant 86 : i32
      %149 = vector.broadcast %c86_i32 : i32 to vector<8x128xi32>
      %150 = arith.cmpi slt, %148, %149 : vector<8x128xi32>
      %cst_50 = arith.constant 0.000000e+00 : f32
      %151 = vector.broadcast %cst_50 : f32 to vector<8x128xf32>
      %152 = arith.select %150, %147, %151 : vector<8x128xi1>, vector<8x128xf32>
      %c0_51 = arith.constant 0 : index
      %c0_52 = arith.constant 0 : index
      %153 = vector.load %arg6[%c0_51, %c0_52] : memref<8x128xf32, #tpu.memory_space<vmem>>, vector<8x128xf32>
      tpu.vector_store %arg6[%c0_51, %c0_52], %152 {strides = array<i32>} : memref<8x128xf32, #tpu.memory_space<vmem>>, vector<8x128xf32>,
      %c0_53 = arith.constant 0 : index
      %c0_54 = arith.constant 0 : index
      %154 = vector.load %arg4[%c0_53, %c0_54] : memref<128x128xf32, #tpu.memory_space<vmem>>, vector<128x128xf32>
      %cst_55 = arith.constant dense<0.000000e+00> : vector<8x128xf32>
      %155 = tpu.matmul %152, %154, %cst_55 {dimension_numbers = #tpu.dot_dimension_numbers<[1], [0], [0], [1], [0, 0, 1, 1], [], []>} : vector<8x128xf32>, vector<128x128xf32>, vector<8x128xf32> -> vector<8x128xf32>
      %156 = arith.mulf %155, %155 : vector<8x128xf32>
      %157 = vector.shape_cast %156 : vector<8x128xf32> to vector<1x8x128xf32>
      %cst_56 = arith.constant dense<0.000000e+00> : vector<1xf32>
      %158 = vector.multi_reduction <add>, %157, %cst_56 [1, 2] : vector<1x8x128xf32> to vector<1xf32>
      %159 = vector.shape_cast %158 : vector<1xf32> to vector<1x1x1xf32>
      %160 = vector.extract %159[0, 0, 0] : f32 from vector<1x1x1xf32>
      %c0_57 = arith.constant 0 : index
      %c0_58 = arith.constant 0 : index
      %161 = memref.load %arg7[%c0_57, %c0_58] : memref<1x1xf32, #tpu.memory_space<smem>>
      memref.store %160, %arg7[%c0_57, %c0_58] : memref<1x1xf32, #tpu.memory_space<smem>>
      %cst_59 = arith.constant 0.000000e+00 : f32
      %c0_60 = arith.constant 0 : index
      %c0_61 = arith.constant 0 : index
      %162 = memref.load %arg8[%c0_60, %c0_61] : memref<1x1xf32, #tpu.memory_space<smem>>
      memref.store %cst_59, %arg8[%c0_60, %c0_61] : memref<1x1xf32, #tpu.memory_space<smem>>
    } else {
    }
    %c0 = arith.constant 0 : index
    %c0_1 = arith.constant 0 : index
    %3 = vector.load %arg6[%c0, %c0_1] : memref<8x128xf32, #tpu.memory_space<vmem>>, vector<8x128xf32>
    %c0_2 = arith.constant 0 : index
    %c0_3 = arith.constant 0 : index
    %4 = vector.load %arg5[%c0_2, %c0_3] : memref<8x128xi32, #tpu.memory_space<vmem>>, vector<8x128xi32>
    %5 = tpu.iota {dimensions = array<i32: 0>} : vector<128x128xi32>
    %6 = vector.extract_strided_slice %4 {offsets = [0, 0], sizes = [1, 128], strides = [1, 1]} : vector<8x128xi32> to vector<1x128xi32>
    %7 = vector.broadcast %6 : vector<1x128xi32> to vector<128x128xi32>
    %8 = arith.cmpi eq, %5, %7 : vector<128x128xi32>
    %cst = arith.constant 1.000000e+00 : f32
    %cst_4 = arith.constant 0.000000e+00 : f32
    %9 = vector.broadcast %cst : f32 to vector<128x128xf32>
    %10 = vector.broadcast %cst_4 : f32 to vector<128x128xf32>
    %11 = arith.select %8, %9, %10 : vector<128x128xi1>, vector<128x128xf32>
    %12 = vector.extract_strided_slice %4 {offsets = [1, 0], sizes = [1, 128], strides = [1, 1]} : vector<8x128xi32> to vector<1x128xi32>
    %13 = vector.broadcast %12 : vector<1x128xi32> to vector<128x128xi32>
    %14 = arith.cmpi eq, %5, %13 : vector<128x128xi32>
    %cst_5 = arith.constant 1.000000e+00 : f32
    %cst_6 = arith.constant 0.000000e+00 : f32
    %15 = vector.broadcast %cst_5 : f32 to vector<128x128xf32>
    %16 = vector.broadcast %cst_6 : f32 to vector<128x128xf32>
    %17 = arith.select %14, %15, %16 : vector<128x128xi1>, vector<128x128xf32>
    %18 = arith.subf %17, %11 : vector<128x128xf32>
    %cst_7 = arith.constant dense<0.000000e+00> : vector<8x128xf32>
    %19 = tpu.matmul %3, %18, %cst_7 {dimension_numbers = #tpu.dot_dimension_numbers<[1], [0], [0], [1], [0, 0, 1, 1], [], []>} : vector<8x128xf32>, vector<128x128xf32>, vector<8x128xf32> -> vector<8x128xf32>
    %20 = vector.extract_strided_slice %4 {offsets = [2, 0], sizes = [1, 128], strides = [1, 1]} : vector<8x128xi32> to vector<1x128xi32>
    %21 = vector.broadcast %20 : vector<1x128xi32> to vector<128x128xi32>
    %22 = arith.cmpi eq, %5, %21 : vector<128x128xi32>
    %cst_8 = arith.constant 1.000000e+00 : f32
    %cst_9 = arith.constant 0.000000e+00 : f32
    %23 = vector.broadcast %cst_8 : f32 to vector<128x128xf32>
    %24 = vector.broadcast %cst_9 : f32 to vector<128x128xf32>
    %25 = arith.select %22, %23, %24 : vector<128x128xi1>, vector<128x128xf32>
    %26 = arith.subf %25, %11 : vector<128x128xf32>
    %cst_10 = arith.constant dense<0.000000e+00> : vector<8x128xf32>
    %27 = tpu.matmul %3, %26, %cst_10 {dimension_numbers = #tpu.dot_dimension_numbers<[1], [0], [0], [1], [0, 0, 1, 1], [], []>} : vector<8x128xf32>, vector<128x128xf32>, vector<8x128xf32> -> vector<8x128xf32>
    %28 = vector.extract_strided_slice %4 {offsets = [3, 0], sizes = [1, 128], strides = [1, 1]} : vector<8x128xi32> to vector<1x128xi32>
    %29 = vector.broadcast %28 : vector<1x128xi32> to vector<128x128xi32>
    %30 = arith.cmpi eq, %5, %29 : vector<128x128xi32>
    %cst_11 = arith.constant 1.000000e+00 : f32
    %cst_12 = arith.constant 0.000000e+00 : f32
    %31 = vector.broadcast %cst_11 : f32 to vector<128x128xf32>
    %32 = vector.broadcast %cst_12 : f32 to vector<128x128xf32>
    %33 = arith.select %30, %31, %32 : vector<128x128xi1>, vector<128x128xf32>
    %34 = arith.subf %33, %11 : vector<128x128xf32>
    %cst_13 = arith.constant dense<0.000000e+00> : vector<8x128xf32>
    %35 = tpu.matmul %3, %34, %cst_13 {dimension_numbers = #tpu.dot_dimension_numbers<[1], [0], [0], [1], [0, 0, 1, 1], [], []>} : vector<8x128xf32>, vector<128x128xf32>, vector<8x128xf32> -> vector<8x128xf32>
    %36 = arith.mulf %19, %19 : vector<8x128xf32>
    %cst_14 = arith.constant dense<0.000000e+00> : vector<128xf32>
    %37 = vector.multi_reduction <add>, %36, %cst_14 [0] : vector<8x128xf32> to vector<128xf32>
    %38 = vector.shape_cast %37 : vector<128xf32> to vector<1x128xf32>
    %cst_15 = arith.constant 9.99999997E-7 : f32
    %39 = vector.broadcast %cst_15 : f32 to vector<1x128xf32>
    %40 = arith.addf %38, %39 : vector<1x128xf32>
    %41 = math.rsqrt %40 : vector<1x128xf32>
    %42 = arith.mulf %41, %41 : vector<1x128xf32>
    %43 = arith.mulf %27, %27 : vector<8x128xf32>
    %cst_16 = arith.constant dense<0.000000e+00> : vector<128xf32>
    %44 = vector.multi_reduction <add>, %43, %cst_16 [0] : vector<8x128xf32> to vector<128xf32>
    %45 = vector.shape_cast %44 : vector<128xf32> to vector<1x128xf32>
    %cst_17 = arith.constant 9.99999997E-7 : f32
    %46 = vector.broadcast %cst_17 : f32 to vector<1x128xf32>
    %47 = arith.addf %45, %46 : vector<1x128xf32>
    %48 = math.rsqrt %47 : vector<1x128xf32>
    %cst_18 = arith.constant 9.99999997E-7 : f32
    %49 = vector.broadcast %cst_18 : f32 to vector<1x128xf32>
    %50 = arith.addf %45, %49 : vector<1x128xf32>
    %51 = arith.mulf %50, %48 : vector<1x128xf32>
    %52 = arith.mulf %19, %27 : vector<8x128xf32>
    %cst_19 = arith.constant dense<0.000000e+00> : vector<128xf32>
    %53 = vector.multi_reduction <add>, %52, %cst_19 [0] : vector<8x128xf32> to vector<128xf32>
    %54 = vector.shape_cast %53 : vector<128xf32> to vector<1x128xf32>
    %55 = arith.mulf %54, %41 : vector<1x128xf32>
    %56 = arith.mulf %55, %48 : vector<1x128xf32>
    %57 = arith.mulf %56, %56 : vector<1x128xf32>
    %cst_20 = arith.constant 1.000000e+00 : f32
    %58 = vector.broadcast %cst_20 : f32 to vector<1x128xf32>
    %59 = arith.subf %58, %57 : vector<1x128xf32>
    %cst_21 = arith.constant 0.000000e+00 : f32
    %60 = vector.broadcast %cst_21 : f32 to vector<1x128xf32>
    %61 = arith.maximumf %59, %60 : vector<1x128xf32>
    %62 = math.sqrt %61 : vector<1x128xf32>
    %63 = arith.mulf %54, %42 : vector<1x128xf32>
    %64 = vector.broadcast %63 : vector<1x128xf32> to vector<8x128xf32>
    %65 = arith.mulf %19, %64 : vector<8x128xf32>
    %66 = arith.subf %27, %65 : vector<8x128xf32>
    %67 = arith.mulf %51, %62 : vector<1x128xf32>
    %68 = arith.mulf %35, %35 : vector<8x128xf32>
    %cst_22 = arith.constant dense<0.000000e+00> : vector<128xf32>
    %69 = vector.multi_reduction <add>, %68, %cst_22 [0] : vector<8x128xf32> to vector<128xf32>
    %70 = vector.shape_cast %69 : vector<128xf32> to vector<1x128xf32>
    %cst_23 = arith.constant 9.99999997E-7 : f32
    %71 = vector.broadcast %cst_23 : f32 to vector<1x128xf32>
    %72 = arith.addf %70, %71 : vector<1x128xf32>
    %73 = math.rsqrt %72 : vector<1x128xf32>
    %cst_24 = arith.constant 9.99999997E-7 : f32
    %74 = vector.broadcast %cst_24 : f32 to vector<1x128xf32>
    %75 = arith.addf %70, %74 : vector<1x128xf32>
    %76 = arith.mulf %75, %73 : vector<1x128xf32>
    %77 = arith.mulf %19, %35 : vector<8x128xf32>
    %cst_25 = arith.constant dense<0.000000e+00> : vector<128xf32>
    %78 = vector.multi_reduction <add>, %77, %cst_25 [0] : vector<8x128xf32> to vector<128xf32>
    %79 = vector.shape_cast %78 : vector<128xf32> to vector<1x128xf32>
    %80 = arith.mulf %79, %41 : vector<1x128xf32>
    %81 = arith.mulf %80, %73 : vector<1x128xf32>
    %82 = arith.mulf %81, %81 : vector<1x128xf32>
    %cst_26 = arith.constant 1.000000e+00 : f32
    %83 = vector.broadcast %cst_26 : f32 to vector<1x128xf32>
    %84 = arith.subf %83, %82 : vector<1x128xf32>
    %cst_27 = arith.constant 0.000000e+00 : f32
    %85 = vector.broadcast %cst_27 : f32 to vector<1x128xf32>
    %86 = arith.maximumf %84, %85 : vector<1x128xf32>
    %87 = math.sqrt %86 : vector<1x128xf32>
    %88 = arith.mulf %79, %42 : vector<1x128xf32>
    %89 = vector.broadcast %88 : vector<1x128xf32> to vector<8x128xf32>
    %90 = arith.mulf %19, %89 : vector<8x128xf32>
    %91 = arith.subf %35, %90 : vector<8x128xf32>
    %92 = arith.mulf %76, %87 : vector<1x128xf32>
    %93 = arith.mulf %66, %91 : vector<8x128xf32>
    %cst_28 = arith.constant dense<0.000000e+00> : vector<128xf32>
    %94 = vector.multi_reduction <add>, %93, %cst_28 [0] : vector<8x128xf32> to vector<128xf32>
    %95 = vector.shape_cast %94 : vector<128xf32> to vector<1x128xf32>
    %96 = arith.mulf %67, %92 : vector<1x128xf32>
    %cst_29 = arith.constant 9.99999997E-7 : f32
    %97 = vector.broadcast %cst_29 : f32 to vector<1x128xf32>
    %98 = arith.addf %96, %97 : vector<1x128xf32>
    %99 = tpu.reciprocal %98 {approx = true} : vector<1x128xf32> -> vector<1x128xf32>
    %100 = arith.mulf %95, %99 : vector<1x128xf32>
    %cst_30 = arith.constant 1.000000e+00 : f32
    %101 = vector.broadcast %cst_30 : f32 to vector<1x128xf32>
    %102 = arith.addf %100, %101 : vector<1x128xf32>
    %103 = arith.mulf %102, %102 : vector<1x128xf32>
    %104 = tpu.iota {dimensions = array<i32: 1>} : vector<1x128xi32>
    %c128_i32 = arith.constant 128 : i32
    %105 = arith.muli %arg0, %c128_i32 : i32
    %106 = vector.broadcast %105 : i32 to vector<1x128xi32>
    %107 = arith.addi %104, %106 : vector<1x128xi32>
    %c252_i32 = arith.constant 252 : i32
    %108 = vector.broadcast %c252_i32 : i32 to vector<1x128xi32>
    %109 = arith.cmpi slt, %107, %108 : vector<1x128xi32>
    %cst_31 = arith.constant 0.000000e+00 : f32
    %110 = vector.broadcast %cst_31 : f32 to vector<1x128xf32>
    %111 = arith.select %109, %103, %110 : vector<1x128xi1>, vector<1x128xf32>
    %c0_32 = arith.constant 0 : index
    %c0_33 = arith.constant 0 : index
    %112 = memref.load %arg8[%c0_32, %c0_33] : memref<1x1xf32, #tpu.memory_space<smem>>
    %113 = vector.shape_cast %111 : vector<1x128xf32> to vector<1x1x128xf32>
    %cst_34 = arith.constant dense<0.000000e+00> : vector<1xf32>
    %114 = vector.multi_reduction <add>, %113, %cst_34 [1, 2] : vector<1x1x128xf32> to vector<1xf32>
    %115 = vector.shape_cast %114 : vector<1xf32> to vector<1x1x1xf32>
    %116 = vector.extract %115[0, 0, 0] : f32 from vector<1x1x1xf32>
    %cst_35 = arith.constant 0.0039682542 : f32
    %117 = arith.mulf %116, %cst_35 : f32
    %118 = arith.addf %112, %117 : f32
    %c0_36 = arith.constant 0 : index
    %c0_37 = arith.constant 0 : index
    %119 = memref.load %arg8[%c0_36, %c0_37] : memref<1x1xf32, #tpu.memory_space<smem>>
    memref.store %118, %arg8[%c0_36, %c0_37] : memref<1x1xf32, #tpu.memory_space<smem>>
    return
  }
  func.func @transform_0(%arg0: i32) -> (i32, i32) {
    %c0_i32 = arith.constant 0 : i32
    %c0_i32_0 = arith.constant 0 : i32
    %c0_i32_1 = arith.constant 0 : i32
    return %c0_i32, %c0_i32_0 : i32, i32
  }
  func.func @transform_1(%arg0: i32) -> (i32, i32) {
    %c0_i32 = arith.constant 0 : i32
    %c0_i32_0 = arith.constant 0 : i32
    %c0_i32_1 = arith.constant 0 : i32
    return %c0_i32, %c0_i32_0 : i32, i32
  }
  func.func @transform_2(%arg0: i32) -> (i32, i32) {
    %c0_i32 = arith.constant 0 : i32
    %c0_i32_0 = arith.constant 0 : i32
    %c0_i32_1 = arith.constant 0 : i32
    return %c0_i32, %c0_i32_0 : i32, i32
  }
  func.func @transform_3(%arg0: i32) -> (i32, i32) {
    %c0_i32 = arith.constant 0 : i32
    %c0_i32_0 = arith.constant 0 : i32
    %c0_i32_1 = arith.constant 0 : i32
    return %c0_i32, %c0_i32_0 : i32, i32
  }
  func.func @transform_4(%arg0: i32) -> (i32, i32) {
    %c0_i32 = arith.constant 0 : i32
    %c0_i32_0 = arith.constant 0 : i32
    return %c0_i32, %arg0 : i32, i32
  }
  func.func @transform_5(%arg0: i32) -> (i32, i32) {
    %c0_i32 = arith.constant 0 : i32
    %c0_i32_0 = arith.constant 0 : i32
    %c0_i32_1 = arith.constant 0 : i32
    return %c0_i32, %c0_i32_0 : i32, i32
  }
  func.func @transform_6(%arg0: i32) -> (i32, i32) {
    %c0_i32 = arith.constant 0 : i32
    %c0_i32_0 = arith.constant 0 : i32
    %c0_i32_1 = arith.constant 0 : i32
    return %c0_i32, %c0_i32_0 : i32, i32
  }
  func.func @transform_7(%arg0: i32) -> (i32, i32) {
    %c0_i32 = arith.constant 0 : i32
    %c0_i32_0 = arith.constant 0 : i32
    %c0_i32_1 = arith.constant 0 : i32
    return %c0_i32, %c0_i32_0 : i32, i32
  }
}

</mosaic_0001>

<bundles_post_ra>
// kernel: model_forward.1
= control target key start
LH: loop header
LB: loop body
LE: loop exit
PB: predicated region body
PF: predicated region fallthrough
CT: control target
= control target key end

     0   :  { %13 = vsyncpa [#allocation3], 0  ;;  %s2114_s0 = inlined_call_operand.vmem [shape: f32[8,128], index: 0, kind: input, shape index: {}]   ;;  %s2115_s1 = inlined_call_operand.vmem [shape: f32[8,128], index: 1, kind: input, shape index: {}]   ;;  %s2116_s2 = inlined_call_operand.vmem [shape: f32[8,1], index: 2, kind: input, shape index: {}]   ;;  %s2117_s3 = inlined_call_operand.hbm [shape: f32[128,128], index: 3, kind: input, shape index: {}]   ;;  %s2118_s4 = inlined_call_operand.hbm [shape: s32[8,256], index: 4, kind: input, shape index: {}]   ;;  %s2119_s5 = inlined_call_operand.vmem [shape: f32[8,128], index: 5, kind: output, shape index: {0}]   ;;  %s2120_s6 = inlined_call_operand.hbm [shape: f32[1,1], index: 6, kind: output, shape index: {1}]   ;;  %s2121_s7 = inlined_call_operand.hbm [shape: f32[1,1], index: 7, kind: output, shape index: {2}]  }
   0x1   :  { %14 = vsyncpa [#allocation6], 0 }
   0x2   :  { %16 = vsyncpa [#allocation6 + $0x1], 0 }
   0x3   :  { %17 = vsyncpa [#allocation4], 0 }
   0x4   :  { %18 = vsyncpa [#allocation9], 0  ;;  %s1561_s24 = smov 0   ;;  %s1563_s25 = smov 0  }
   0x5   :  { %s1565_s26 = smov 0   ;;  %s1567_s27 = smov 0  }
   0x6 LB: > { %s1580_s28 = sadd.s32 4294967295, %s1507_s27   ;;  %p128_p0 = scmp.ne.s32.totalorder %s1499_s25, %s1495_s24  ;;  %s1507_s27 = sphi %s1567_s27, %s2137_s27   ;;  %s1503_s26 = sphi %s1565_s26, %s2136_s26   ;;  %s1499_s25 = sphi %s1563_s25, %s2135_s25   ;;  %s1495_s24 = sphi %s1561_s24, %s2134_s24  }
   0x7   : > { %p2122_p1 = scmp.eq.s32.totalorder %s1580_s28, 0  ;;  %p1066_p2 = scmp.ge.s32.totalorder %s1507_s27, 1 }
   0x8   : > { %p202_p3 = scmp.lt.s32.totalorder %s1507_s27, 3  ;;  %s1509_s8 = smov [#allocation2]  }
   0x9   : > { %p1589_p5 = por %p2122_p1, %p128_p0  ;;  %s223_s9 = sshll.u32 %s1509_s8, 4  ;;  %s224_s9 = int_to_ptr.vmem [resolvable:$true] %s223_s9 }
   0xa   : > { %p1593_p6 = pnand %p1066_p2, %p202_p3  ;;  %s1606_s11 = sadd.s32 1, %s1507_s27  }
   0xb   : > { %s2125_s29 = scalar_select %p1589_p5, 1, 0 }
   0xc   : > { %s2126_s30 = scalar_select %p1593_p6, 1, 0 }
   0xd   : > { %p1309_p7 = pneg %p1593_p6  ;;  %s115_s12 = sadd.s32 1, %s1503_s26 }
   0xe   : > { %s112_s13 = ssub.s32 %s1507_s27, %s1606_s11  ;;  %s1398_s14 = scalar_lea.vmem %s224_s9, 2048 }
   0xf   : > { %p1601_p8 = pnand %p1309_p7, %p2122_p1  ;;  %p1399_p10 = scmp.ne.s32.totalorder %s224_s9, %s1398_s14 }
  0x10   : > { %p1406_p13 = scmp.lt.s32.totalorder %s224_s9, %s224_s9  ;;  %p1407_p0 = scmp.lt.s32.totalorder %s1398_s14, %s1398_s14 }
  0x11   : > { %p1389_p9 = pneg %p1601_p8 }
  0x12   : > { %p1408_p2 = por %p1407_p0, %p1406_p13 }
  0x13   : > { %p1401_p11 = pnand %p1399_p10, %p1389_p9 }
  0x15   : > { %p1402_p12 = pneg %p1401_p11 }
  0x17   : > { %p1409_p3 = pnand %p1408_p2, %p1402_p12 }
  0x19   : > { %1412 = shalt.err (!%p1409_p3)
}
  0x1a   : > { %s1510_s15 = smov 128   ;;  %s1511_s16 = smov 8  }
  0x1b   : > { %1312 = dma.hbm_to_vmem [thread:$0]  (!%p1601_p8), %s2117_s3, 2048, %s224_s9, [#allocation3], %s1510_s15, %s1510_s15, %s1511_s16  }
  0x1c   : > { %p113_p7 = scmp.eq.s32.totalorder %s112_s13, 0  ;;  %p122_p9 = scmp.ne.s32.totalorder %s1503_s26, %s1499_s25 }
  0x1d   : > { %p123_p10 = scmp.eq.s32.totalorder %s1507_s27, 0  ;;  %p1318_p11 = scmp.lt.s32.totalorder %s1507_s27, 2 }
  0x1e   : > { %s1623_s19 = scalar_select %p113_p7, %s1503_s26, %s115_s12  }
  0x1f   : > { %p124_p12 = por %p123_p10, %p122_p9  ;;  %s237_s20 = sand.u32 1, %s1503_s26  }
  0x20   : > { %s1069_s21 = sshll.u32 %s237_s20, 3  ;;  %s1070_s22 = sshll.u32 %s1507_s27, 7 }
  0x21   : > { %s1630_s8 = scalar_lea.hbm %s2118_s4, %s1070_s22  ;;  %s241_s10 = scalar_lea.vmem [#allocation5], %s1069_s21 }
  0x22   : > { %s248_s9 = sshll.u32 %s241_s10, 4  ;;  %p1632_p8 = pnand %p1318_p11, %p124_p12  ;;  %s249_s9 = int_to_ptr.vmem [resolvable:$true] %s248_s9 }
  0x23   : > { %s238_s12 = scalar_lea.sflag [#allocation6], %s237_s20  ;;  %s1413_s14 = scalar_lea.hbm %s1630_s8, 128 }
  0x24   : > { %p1414_p13 = scmp.ne.s32.totalorder %s1630_s8, %s1413_s14  ;;  %p1415_p0 = pneg %p1632_p8 }
  0x25   : > { %s1418_s16 = scalar_lea.hbm %s2118_s4, 256  ;;  %p1419_p7 = scmp.lt.s32.totalorder %s1630_s8, %s2118_s4 }
  0x26   : > { %p1416_p2 = pnand %p1415_p0, %p1414_p13  ;;  %p1420_p9 = scmp.lt.s32.totalorder %s1418_s16, %s1413_s14 }
  0x28   : > { %p1417_p3 = pneg %p1416_p2  ;;  %p1421_p10 = por %p1420_p9, %p1419_p7 }
  0x2a   : > { %p1422_p11 = pnand %p1421_p10, %p1417_p3 }
  0x2c   : > { %1425 = shalt.err (!%p1422_p11)
}
  0x2d   : > { %s1426_s21 = scalar_lea.vmem %s249_s9, 128  ;;  %s1512_s20 = smov [#allocation5]  }
  0x2e   : > { %p1427_p12 = scmp.ne.s32.totalorder %s249_s9, %s1426_s21  ;;  %s1431_s22 = sshll.u32 %s1512_s20, 4  ;;  %s1432_s22 = int_to_ptr.vmem [resolvable:$false] %s1431_s22 }
  0x2f   : > { %s1433_s23 = scalar_lea.vmem %s1432_s22, 256  ;;  %p1434_p13 = scmp.lt.s32.totalorder %s249_s9, %s1432_s22 }
  0x30   : > { %p1429_p4 = pnand %p1427_p12, %p1415_p0  ;;  %p1435_p2 = scmp.lt.s32.totalorder %s1433_s23, %s1426_s21 }
  0x32   : > { %p1430_p1 = pneg %p1429_p4  ;;  %p1436_p5 = por %p1435_p2, %p1434_p13 }
  0x34   : > { %p1437_p6 = pnand %p1436_p5, %p1430_p1 }
  0x36   : > { %1440 = shalt.err (!%p1437_p6)
}
  0x37   : > { %1316 = dma.hbm_to_vmem [thread:$0]  (!%p1632_p8), %s1630_s8, 128, %s249_s9, %s238_s12  }
  0x38   : > { %p2129_p3 = scmp.ne.s32.totalorder %s2126_s30, 0 }
  0x39   : > { %p2130_p7 = scmp.eq.s32.totalorder (!%p2129_p3), %s1580_s28, 0 }
  0x3a   : > { %257 = sbr.rel (%p2129_p3) target bundleno = 1187 (0x4a3), region = 40 }
  0x3f   : > { %1478 = dma.done.wait (%p2130_p7), [#allocation3], 2048   ;;  %p2131_p4 = pmov %p2130_p7 }
  0x40   : > { %s263_s24 = sand.u32 1, %s1499_s25   ;;  %p2132_p1 = scmp.ne.s32.totalorder %s2125_s29, 0 }
  0x41   : > { %1480 = vsyncadd (%p2131_p4), [#allocation3], 4294965248  ;;  %s1657_s10 = sshll.u32 %s263_s24, 3  ;;  %s264_s14 = scalar_lea.sflag [#allocation6], %s263_s24 }
  0x42   : > { %s267_s27 = scalar_lea.vmem [#allocation5], %s1657_s10 }
  0x43   : > { %1482 = dma.done.wait (%p2132_p1), %s264_s14, 128  }
  0x44   : > { %1484 = vsyncadd (%p2132_p1), %s264_s14, 4294967168  ;;  %p2133_p5 = scmp.ne.s32.totalorder %s1580_s28, 0 }
  0x45   : > { %s1516_s17 = smov (!%p2133_p5), 0.0  }
  0x46   : > { %296 = sbr.rel (%p2133_p5) target bundleno = 621 (0x26d), region = 52  ;;  %437 = sst [smem:[#allocation8]] (!%p2133_p5), %s1516_s17 }
  0x4b   : > { %v299_v0 = vld [vmem:[%s2116_s2] sm:$0xff]  ;;  %v353_v1 = vld [vmem:[#allocation2 + $0x78] sm:$0xff]  ;;  %v1513_v2 = vmov 0   ;;  %v1514_v3 = vmov 0.0   ;;  %v352_v4 = vld [vmem:[#allocation2 + $0x70] sm:$0xff]  ;;  %vm1515_vm0 = vmmov 0   ;;  %v333_v33 = vlaneseq }
  0x4c   : > { %1367 = vset.pattern.permute.xlu0 %v1513_v2  ;;  %1369 = vtanh.f32 %v299_v0  ;;  %1368 = vset.pattern.permute.xlu1 %v1513_v2  ;;  %v351_v5 = vld [vmem:[#allocation2 + $0x68] sm:$0xff]  ;;  %v350_v6 = vld [vmem:[#allocation2 + $0x60] sm:$0xff]  ;;  %v349_v7 = vld [vmem:[#allocation2 + $0x58] sm:$0xff] }
  0x4d   : > { %1151 = vmatprep.subr.mxu0 %v1514_v3  ;;  %v348_v8 = vld [vmem:[#allocation2 + $0x50] sm:$0xff]  ;;  %v347_v9 = vld [vmem:[#allocation2 + $0x48] sm:$0xff]  ;;  %v346_v11 = vld [vmem:[#allocation2 + $0x40] sm:$0xff]  ;;  %1183 = vmatprep.mubr.msk.f32.mxu0 %vm1515_vm0, %v1514_v3  ;;  %v334_v36 = vand.u32 127, %v333_v33 }
  0x4e   : > { %1152 = vmatpush3.msra.mxu0 %v353_v1  ;;  %v345_v13 = vld [vmem:[#allocation2 + $0x38] sm:$0xff]  ;;  %v344_v15 = vld [vmem:[#allocation2 + $0x30] sm:$0xff]  ;;  %v343_v16 = vld [vmem:[#allocation2 + $0x28] sm:$0xff] }
  0x4f   : > { %1153 = vmatprep.subr.mxu0 %v1514_v3  ;;  %v342_v17 = vld [vmem:[#allocation2 + $0x20] sm:$0xff]  ;;  %v341_v18 = vld [vmem:[#allocation2 + $0x18] sm:$0xff]  ;;  %v340_v19 = vld [vmem:[#allocation2 + $0x10] sm:$0xff]  ;;  %vm335_vm2 = vcmp.lt.s32.totalorder %v334_v36, 86 }
  0x50   : > { %1154 = vmatpush3.msra.mxu0 %v352_v4  ;;  %v339_v20 = vld [vmem:[#allocation2 + $0x8] sm:$0xff]  ;;  %v338_v21 = vld [vmem:[#allocation2] sm:$0xff] }
  0x51   : > { %1155 = vmatprep.subr.mxu0 %v1514_v3  ;;  %v298_v22 = vld [vmem:[%s2115_s1] sm:$0xff] }
  0x52   : > { %1156 = vmatpush3.msra.mxu0 %v351_v5  ;;  %v303_v23 = vsub.f32 0.0, %v298_v22  ;;  %v297_v25 = vld [vmem:[%s2114_s0] sm:$0xff] }
  0x53   : > { %1157 = vmatprep.subr.mxu0 %v1514_v3  ;;  %v301_v26 = vand.u32 2147483647, %v297_v25  ;;  %vm310_vm1 = vcmp.ge.f32.partialorder %v297_v25, 0.0 }
  0x54   : > { %1158 = vmatpush3.msra.mxu0 %v350_v6  ;;  %v304_v24 = vmul.f32 1.442695, %v303_v23 }
  0x55   : > { %1159 = vmatprep.subr.mxu0 %v1514_v3  ;;  %v302_v27 = vsub.f32 1.0, %v301_v26 }
  0x56   : > { %1160 = vmatpush3.msra.mxu0 %v349_v7  ;;  %1371 = vpow2.f32 %v304_v24 }
  0x57   : > { %1161 = vmatprep.subr.mxu0 %v1514_v3 }
  0x58   : > { %1162 = vmatpush3.msra.mxu0 %v348_v8 }
  0x59   : > { %v1370_v10 = vpop.eup %1369  ;;  %1163 = vmatprep.subr.mxu0 %v1514_v3 }
  0x5a   : > { %v311_v12 = vsub.f32 1.0, %v1370_v10  ;;  %329 = vperm.xlu1 %1368, %v1370_v10   ;;  %1164 = vmatpush3.msra.mxu0 %v347_v9  ;;  %v319_v14 = vadd.f32 1.0, %v1370_v10 }
  0x5b   : > { %1165 = vmatprep.subr.mxu0 %v1514_v3 }
  0x5c   : > { %314 = vperm.xlu0 %1367, %v311_v12   ;;  %1166 = vmatpush3.msra.mxu0 %v346_v11 }
  0x5d   : > { %1167 = vmatprep.subr.mxu0 %v1514_v3 }
  0x5e   : > { %1168 = vmatpush3.msra.mxu0 %v345_v13 }
  0x5f   : > { %1169 = vmatprep.subr.mxu0 %v1514_v3 }
  0x60   : > { %322 = vperm.xlu0 %1367, %v319_v14   ;;  %1170 = vmatpush3.msra.mxu0 %v344_v15 }
  0x61   : > { %1171 = vmatprep.subr.mxu0 %v1514_v3 }
  0x62   : > { %1172 = vmatpush3.msra.mxu0 %v343_v16 }
  0x63   : > { %1173 = vmatprep.subr.mxu0 %v1514_v3  ;;  %v1372_v28 = vpop.eup %1371 }
  0x64   : > { %1174 = vmatpush3.msra.mxu0 %v342_v17  ;;  %v306_v29 = vmul.f32 %v1372_v28, %v302_v27 }
  0x65   : > { %1175 = vmatprep.subr.mxu0 %v1514_v3 }
  0x66   : > { %1176 = vmatpush3.msra.mxu0 %v341_v18  ;;  %v307_v30 = vadd.f32 %v306_v29, %v301_v26 }
  0x67   : > { %1177 = vmatprep.subr.mxu0 %v1514_v3 }
  0x68   : > { %1178 = vmatpush3.msra.mxu0 %v340_v19  ;;  %1373 = vrcp.f32 %v307_v30 }
  0x69   : > { %1179 = vmatprep.subr.mxu0 %v1514_v3 }
  0x6a   : > { %1180 = vmatpush3.msra.mxu0 %v339_v20 }
  0x6b   : > { %1181 = vmatprep.subr.mxu0 %v1514_v3 }
  0x6c   : > { %1182 = vmatpush3.msra.mxu0 %v338_v21 }
  0x75   : > { %v1374_v31 = vpop.eup %1373 }
  0x76   : > { %v309_v32 = vmul.f32 %v1374_v31, %v301_v26 }
  0x78   : > { %v318_v35 = vsub.f32 0.0, %v309_v32 }
  0xd5   : > { %v330_v40 = vpop.permute.xlu1 %329 }
  0xd7   : > { %v315_v34 = vpop.permute.xlu0 %314 }
  0xd8   : > { %v317_v38 = vmul.f32 %v315_v34, %v309_v32 }
  0xdb   : > { %v323_v37 = vpop.permute.xlu0 %322 }
  0xdc   : > { %v325_v39 = vmul.f32 %v323_v37, %v318_v35 }
  0xde   : > { %v326_v41 = vsel %vm310_vm1, %v317_v38, %v325_v39 }
  0xdf   : > { %v332_v42 = vadd.f32 %v330_v40, %v326_v41 }
  0xe1   : > { %v336_v43 = vsel %vm335_vm2, %v332_v42, 0.0  ;;  %1184 = vmatmul.mubr.msk.f32.vlgmr.msra.gmra.mxu0 %vm335_vm2, %v332_v42 }
  0xe2   : > { %337 = vst [vmem:[%s2119_s5] sm:$0xff] %v336_v43 }
 0x1a1   : > { %v420_v44 = vpop.f32.mrf.mxu0 }
 0x1a2   : > { %v424_v45 = vmul.f32 %v420_v44, %v420_v44 }
 0x1a3   : > { %v1185_v46 = vpop.f32.mrf.mxu0 }
 0x1a4   : > { %425 = vadd.xlane.f32.xlu1 %v424_v45 }
 0x22d   : > { %v426_v47 = vpop.xlane.xlu1 %425 }
 0x22e   : > { %v427_v48 = vrot.slane %v426_v47, 4 }
 0x230   : > { %v428_v49 = vadd.f32 %v427_v48, %v426_v47 }
 0x232   : > { %v429_v50 = vrot.slane %v428_v49, 2 }
 0x234   : > { %v430_v51 = vadd.f32 %v429_v50, %v428_v49 }
 0x236   : > { %v431_v52 = vrot.slane %v430_v51, 1 }
 0x238   : > { %v432_v53 = vadd.f32 %v431_v52, %v430_v51 }
 0x23a   : > { %1291 = vpush %v432_v53 }
 0x26b   : > { %s1292_s18 = spop %1291 }
 0x26c   : > { %435 = sst [smem:[#allocation7]] %s1292_s18 }
 0x26d PF: > { %v440_v54 = vlaneseq  ;;  %v1517_v55 = vmov 0.0   ;;  %vm1518_vm3 = vmmov 0   ;;  %v439_v57 = vld [vmem:[%s267_s27] sm:$0xff]  ;;  %s1076_s22 = sshll.u32 %s1580_s28, 7  ;;  %p1320_p6 = scmp.eq.s32.totalorder %s1580_s28, 1 }
 0x26e   : > { %1186 = vmatprep.subr.mxu0 %v1517_v55  ;;  %1221 = vmatprep.subr.mxu1 %v1517_v55  ;;  %s1519_s23 = smov [#allocation7]   ;;  %s955_s14 = sld [smem:[#allocation8]] }
 0x26f   : > { %v1681_v56 = vshrl.u32 %v440_v54, 7  ;;  %1218 = vmatprep.mubr.msk.f32.mxu0 %vm1518_vm3, %v1517_v55  ;;  %1253 = vmatprep.mubr.msk.f32.mxu1 %vm1518_vm3, %v1517_v55  ;;  %1302 = dma.smem_to_hbm (%p1320_p6), %s1519_s23, 16, %s2120_s6, [#allocation4]  }
 0x270   : > { %s1520_s29 = smov [#allocation8]  }
 0x271   : > { %v1690_v58 = vadd.s32 120, %v1681_v56  ;;  %v459_v59 = vsub.s32 0, %v1681_v56  ;;  %v495_v60 = vsub.s32 1, %v1681_v56  ;;  %v739_v61 = vsub.s32 3, %v1681_v56 }
 0x272   : > { %v617_v62 = vsub.s32 2, %v1681_v56  ;;  %v1697_v63 = vadd.s32 112, %v1681_v56  ;;  %v1704_v2 = vadd.s32 104, %v1681_v56  ;;  %v1711_v5 = vadd.s32 96, %v1681_v56 }
 0x273   : > { %v1699_v0 = vrot.slane %v439_v57, %v459_v59  ;;  %v1701_v1 = vrot.slane %v439_v57, %v495_v60  ;;  %v1706_v3 = vrot.slane %v439_v57, %v739_v61  ;;  %v1714_v6 = vadd.s32 88, %v1681_v56 }
 0x274   : > { %v1708_v4 = vrot.slane %v439_v57, %v617_v62  ;;  %v1723_v7 = vadd.s32 80, %v1681_v56  ;;  %v1732_v10 = vadd.s32 72, %v1681_v56  ;;  %v1740_v14 = vadd.s32 64, %v1681_v56 }
 0x275   : > { %vm476_vm4 = vcmp.eq.s32.totalorder %v1690_v58, %v1699_v0  ;;  %vm512_vm5 = vcmp.eq.s32.totalorder %v1690_v58, %v1701_v1  ;;  %vm475_vm6 = vcmp.eq.s32.totalorder %v1697_v63, %v1699_v0  ;;  %vm511_vm8 = vcmp.eq.s32.totalorder %v1697_v63, %v1701_v1 }
 0x276   : > { %v1726_v8 = vsel %vm476_vm4, 1.0, %v1517_v55  ;;  %v528_v9 = vsel %vm512_vm5, 1.0, %v1517_v55  ;;  %vm634_vm7 = vcmp.eq.s32.totalorder %v1690_v58, %v1708_v4  ;;  %v1737_v13 = vsel %vm475_vm6, 1.0, %v1517_v55 }
 0x277   : > { %v544_v11 = vsub.f32 %v528_v9, %v1726_v8  ;;  %v650_v12 = vsel %vm634_vm7, 1.0, %v1517_v55  ;;  %vm633_vm9 = vcmp.eq.s32.totalorder %v1697_v63, %v1708_v4  ;;  %vm474_vm10 = vcmp.eq.s32.totalorder %v1704_v2, %v1699_v0 }
 0x278   : > { %v666_v15 = vsub.f32 %v650_v12, %v1726_v8  ;;  %v527_v16 = vsel %vm511_vm8, 1.0, %v1517_v55  ;;  %v649_v17 = vsel %vm633_vm9, 1.0, %v1517_v55  ;;  %v1752_v18 = vsel %vm474_vm10, 1.0, %v1517_v55 }
 0x279   : > { %1187 = vmatpush3.msra.mxu0 %v544_v11  ;;  %vm510_vm11 = vcmp.eq.s32.totalorder %v1704_v2, %v1701_v1  ;;  %v543_v19 = vsub.f32 %v527_v16, %v1737_v13  ;;  %v665_v20 = vsub.f32 %v649_v17, %v1737_v13  ;;  %vm632_vm12 = vcmp.eq.s32.totalorder %v1704_v2, %v1708_v4 }
 0x27a   : > { %1222 = vmatpush3.msra.mxu1 %v666_v15  ;;  %1188 = vmatprep.subr.mxu0 %v1517_v55  ;;  %v526_v21 = vsel %vm510_vm11, 1.0, %v1517_v55  ;;  %vm756_vm13 = vcmp.eq.s32.totalorder %v1690_v58, %v1706_v3  ;;  %v648_v23 = vsel %vm632_vm12, 1.0, %v1517_v55  ;;  %vm473_vm14 = vcmp.eq.s32.totalorder %v1711_v5, %v1699_v0 }
 0x27b   : > { %1223 = vmatprep.subr.mxu1 %v1517_v55  ;;  %v542_v22 = vsub.f32 %v526_v21, %v1752_v18  ;;  %vm509_vm15 = vcmp.eq.s32.totalorder %v1711_v5, %v1701_v1  ;;  %1189 = vmatpush3.msra.mxu0 %v543_v19  ;;  %v664_v24 = vsub.f32 %v648_v23, %v1752_v18  ;;  %v1773_v25 = vsel %vm473_vm14, 1.0, %v1517_v55 }
 0x27c   : > { %1224 = vmatpush3.msra.mxu1 %v665_v20  ;;  %v525_v26 = vsel %vm509_vm15, 1.0, %v1517_v55  ;;  %vm631_vm0 = vcmp.eq.s32.totalorder %v1711_v5, %v1708_v4  ;;  %1190 = vmatprep.subr.mxu0 %v1517_v55  ;;  %vm472_vm1 = vcmp.eq.s32.totalorder %v1714_v6, %v1699_v0  ;;  %vm508_vm2 = vcmp.eq.s32.totalorder %v1714_v6, %v1701_v1 }
 0x27d   : > { %1225 = vmatprep.subr.mxu1 %v1517_v55  ;;  %v541_v27 = vsub.f32 %v525_v26, %v1773_v25  ;;  %v647_v28 = vsel %vm631_vm0, 1.0, %v1517_v55  ;;  %1191 = vmatpush3.msra.mxu0 %v542_v22  ;;  %v1788_v30 = vsel %vm472_vm1, 1.0, %v1517_v55  ;;  %v524_v31 = vsel %vm508_vm2, 1.0, %v1517_v55 }
 0x27e   : > { %1226 = vmatpush3.msra.mxu1 %v664_v24  ;;  %v663_v29 = vsub.f32 %v647_v28, %v1773_v25  ;;  %vm630_vm4 = vcmp.eq.s32.totalorder %v1714_v6, %v1708_v4  ;;  %1192 = vmatprep.subr.mxu0 %v1517_v55  ;;  %v540_v32 = vsub.f32 %v524_v31, %v1788_v30  ;;  %v1843_v49 = vadd.s32 56, %v1681_v56 }
 0x27f   : > { %1227 = vmatprep.subr.mxu1 %v1517_v55  ;;  %v646_v33 = vsel %vm630_vm4, 1.0, %v1517_v55  ;;  %vm471_vm5 = vcmp.eq.s32.totalorder %v1723_v7, %v1699_v0  ;;  %vm507_vm6 = vcmp.eq.s32.totalorder %v1723_v7, %v1701_v1  ;;  %1193 = vmatpush3.msra.mxu0 %v541_v27  ;;  %vm629_vm7 = vcmp.eq.s32.totalorder %v1723_v7, %v1708_v4 }
 0x280   : > { %1228 = vmatpush3.msra.mxu1 %v663_v29  ;;  %v662_v34 = vsub.f32 %v646_v33, %v1788_v30  ;;  %v1803_v35 = vsel %vm471_vm5, 1.0, %v1517_v55  ;;  %v523_v36 = vsel %vm507_vm6, 1.0, %v1517_v55  ;;  %1194 = vmatprep.subr.mxu0 %v1517_v55  ;;  %v645_v38 = vsel %vm629_vm7, 1.0, %v1517_v55 }
 0x281   : > { %1229 = vmatprep.subr.mxu1 %v1517_v55  ;;  %v539_v37 = vsub.f32 %v523_v36, %v1803_v35  ;;  %vm470_vm8 = vcmp.eq.s32.totalorder %v1732_v10, %v1699_v0  ;;  %vm506_vm9 = vcmp.eq.s32.totalorder %v1732_v10, %v1701_v1  ;;  %1195 = vmatpush3.msra.mxu0 %v540_v32  ;;  %v1846_v50 = vadd.s32 48, %v1681_v56 }
 0x282   : > { %1230 = vmatpush3.msra.mxu1 %v662_v34  ;;  %v661_v39 = vsub.f32 %v645_v38, %v1803_v35  ;;  %v1818_v40 = vsel %vm470_vm8, 1.0, %v1517_v55  ;;  %v522_v41 = vsel %vm506_vm9, 1.0, %v1517_v55  ;;  %vm628_vm10 = vcmp.eq.s32.totalorder %v1732_v10, %v1708_v4  ;;  %1196 = vmatprep.subr.mxu0 %v1517_v55 }
 0x283   : > { %1231 = vmatprep.subr.mxu1 %v1517_v55  ;;  %v538_v42 = vsub.f32 %v522_v41, %v1818_v40  ;;  %v644_v43 = vsel %vm628_vm10, 1.0, %v1517_v55  ;;  %vm469_vm11 = vcmp.eq.s32.totalorder %v1740_v14, %v1699_v0  ;;  %vm505_vm12 = vcmp.eq.s32.totalorder %v1740_v14, %v1701_v1  ;;  %1197 = vmatpush3.msra.mxu0 %v539_v37 }
 0x284   : > { %1232 = vmatpush3.msra.mxu1 %v661_v39  ;;  %v660_v44 = vsub.f32 %v644_v43, %v1818_v40  ;;  %v1833_v45 = vsel %vm469_vm11, 1.0, %v1517_v55  ;;  %v521_v46 = vsel %vm505_vm12, 1.0, %v1517_v55  ;;  %vm627_vm14 = vcmp.eq.s32.totalorder %v1740_v14, %v1708_v4  ;;  %1198 = vmatprep.subr.mxu0 %v1517_v55 }
 0x285   : > { %1233 = vmatprep.subr.mxu1 %v1517_v55  ;;  %v537_v47 = vsub.f32 %v521_v46, %v1833_v45  ;;  %v643_v48 = vsel %vm627_vm14, 1.0, %v1517_v55  ;;  %v1852_v51 = vsel %vm756_vm13, 1.0, %v1517_v55  ;;  %1199 = vmatpush3.msra.mxu0 %v538_v42  ;;  %v1856_v53 = vadd.s32 40, %v1681_v56 }
 0x286   : > { %1234 = vmatpush3.msra.mxu1 %v660_v44  ;;  %v659_v52 = vsub.f32 %v643_v48, %v1833_v45  ;;  %v1859_v57 = vadd.s32 32, %v1681_v56  ;;  %1200 = vmatprep.subr.mxu0 %v1517_v55  ;;  %vm468_vm15 = vcmp.eq.s32.totalorder %v1843_v49, %v1699_v0  ;;  %vm504_vm13 = vcmp.eq.s32.totalorder %v1843_v49, %v1701_v1 }
 0x287   : > { %1235 = vmatprep.subr.mxu1 %v1517_v55  ;;  %vm626_vm0 = vcmp.eq.s32.totalorder %v1843_v49, %v1708_v4  ;;  %v1870_v58 = vadd.s32 24, %v1681_v56  ;;  %1201 = vmatpush3.msra.mxu0 %v537_v47  ;;  %v1873_v59 = vsel %vm468_vm15, 1.0, %v1517_v55  ;;  %v520_v60 = vsel %vm504_vm13, 1.0, %v1517_v55 }
 0x288   : > { %1236 = vmatpush3.msra.mxu1 %v659_v52  ;;  %v642_v61 = vsel %vm626_vm0, 1.0, %v1517_v55  ;;  %vm467_vm1 = vcmp.eq.s32.totalorder %v1846_v50, %v1699_v0  ;;  %1202 = vmatprep.subr.mxu0 %v1517_v55  ;;  %v536_v62 = vsub.f32 %v520_v60, %v1873_v59  ;;  %vm503_vm2 = vcmp.eq.s32.totalorder %v1846_v50, %v1701_v1 }
 0x289   : > { %1237 = vmatprep.subr.mxu1 %v1517_v55  ;;  %v658_v9 = vsub.f32 %v642_v61, %v1873_v59  ;;  %v1884_v11 = vsel %vm467_vm1, 1.0, %v1517_v55  ;;  %v519_v12 = vsel %vm503_vm2, 1.0, %v1517_v55  ;;  %vm625_vm4 = vcmp.eq.s32.totalorder %v1846_v50, %v1708_v4 }
 0x28a   : > { %vm466_vm5 = vcmp.eq.s32.totalorder %v1856_v53, %v1699_v0  ;;  %vm502_vm6 = vcmp.eq.s32.totalorder %v1856_v53, %v1701_v1  ;;  %1203 = vmatpush3.msra.mxu0 %v536_v62  ;;  %v535_v15 = vsub.f32 %v519_v12, %v1884_v11  ;;  %v641_v16 = vsel %vm625_vm4, 1.0, %v1517_v55 }
 0x28b   : > { %1238 = vmatpush3.msra.mxu1 %v658_v9  ;;  %v1898_v17 = vsel %vm466_vm5, 1.0, %v1517_v55  ;;  %v518_v19 = vsel %vm502_vm6, 1.0, %v1517_v55  ;;  %1204 = vmatprep.subr.mxu0 %v1517_v55  ;;  %v657_v20 = vsub.f32 %v641_v16, %v1884_v11  ;;  %vm624_vm7 = vcmp.eq.s32.totalorder %v1856_v53, %v1708_v4 }
 0x28c   : > { %1239 = vmatprep.subr.mxu1 %v1517_v55  ;;  %v534_v21 = vsub.f32 %v518_v19, %v1898_v17  ;;  %v1908_v22 = vadd.s32 16, %v1681_v56  ;;  %1205 = vmatpush3.msra.mxu0 %v535_v15  ;;  %v640_v23 = vsel %vm624_vm7, 1.0, %v1517_v55  ;;  %vm465_vm8 = vcmp.eq.s32.totalorder %v1859_v57, %v1699_v0 }
 0x28d   : > { %vm501_vm9 = vcmp.eq.s32.totalorder %v1859_v57, %v1701_v1  ;;  %vm623_vm10 = vcmp.eq.s32.totalorder %v1859_v57, %v1708_v4  ;;  %1240 = vmatpush3.msra.mxu1 %v657_v20  ;;  %1206 = vmatprep.subr.mxu0 %v1517_v55  ;;  %v656_v24 = vsub.f32 %v640_v23, %v1898_v17  ;;  %v1920_v26 = vsel %vm465_vm8, 1.0, %v1517_v55 }
 0x28e   : > { %v517_v27 = vsel %vm501_vm9, 1.0, %v1517_v55  ;;  %v639_v28 = vsel %vm623_vm10, 1.0, %v1517_v55  ;;  %1241 = vmatprep.subr.mxu1 %v1517_v55  ;;  %1207 = vmatpush3.msra.mxu0 %v534_v21  ;;  %vm464_vm11 = vcmp.eq.s32.totalorder %v1870_v58, %v1699_v0  ;;  %v1930_v32 = vadd.s32 8, %v1681_v56 }
 0x28f   : > { %v533_v29 = vsub.f32 %v517_v27, %v1920_v26  ;;  %v655_v31 = vsub.f32 %v639_v28, %v1920_v26  ;;  %1242 = vmatpush3.msra.mxu1 %v656_v24  ;;  %1208 = vmatprep.subr.mxu0 %v1517_v55  ;;  %v1934_v33 = vsel %vm464_vm11, 1.0, %v1517_v55  ;;  %vm500_vm12 = vcmp.eq.s32.totalorder %v1870_v58, %v1701_v1 }
 0x290   : > { %vm622_vm14 = vcmp.eq.s32.totalorder %v1870_v58, %v1708_v4  ;;  %vm463_vm15 = vcmp.eq.s32.totalorder %v1908_v22, %v1699_v0  ;;  %1243 = vmatprep.subr.mxu1 %v1517_v55  ;;  %v516_v34 = vsel %vm500_vm12, 1.0, %v1517_v55  ;;  %vm499_vm13 = vcmp.eq.s32.totalorder %v1908_v22, %v1701_v1 }
 0x291   : > { %1209 = vmatpush3.msra.mxu0 %v533_v29  ;;  %v638_v36 = vsel %vm622_vm14, 1.0, %v1517_v55  ;;  %v1946_v37 = vsel %vm463_vm15, 1.0, %v1517_v55  ;;  %1244 = vmatpush3.msra.mxu1 %v655_v31  ;;  %v532_v38 = vsub.f32 %v516_v34, %v1934_v33  ;;  %v515_v41 = vsel %vm499_vm13, 1.0, %v1517_v55 }
 0x292   : > { %1210 = vmatprep.subr.mxu0 %v1517_v55  ;;  %v654_v39 = vsub.f32 %v638_v36, %v1934_v33  ;;  %vm621_vm0 = vcmp.eq.s32.totalorder %v1908_v22, %v1708_v4  ;;  %1245 = vmatprep.subr.mxu1 %v1517_v55  ;;  %v531_v42 = vsub.f32 %v515_v41, %v1946_v37 }
 0x293   : > { %v637_v43 = vsel %vm621_vm0, 1.0, %v1517_v55  ;;  %vm462_vm1 = vcmp.eq.s32.totalorder %v1930_v32, %v1699_v0  ;;  %vm498_vm2 = vcmp.eq.s32.totalorder %v1930_v32, %v1701_v1  ;;  %1211 = vmatpush3.msra.mxu0 %v532_v38  ;;  %vm620_vm4 = vcmp.eq.s32.totalorder %v1930_v32, %v1708_v4 }
 0x294   : > { %1246 = vmatpush3.msra.mxu1 %v654_v39  ;;  %v653_v44 = vsub.f32 %v637_v43, %v1946_v37  ;;  %v1965_v46 = vsel %vm462_vm1, 1.0, %v1517_v55  ;;  %v514_v47 = vsel %vm498_vm2, 1.0, %v1517_v55  ;;  %1212 = vmatprep.subr.mxu0 %v1517_v55  ;;  %v636_v52 = vsel %vm620_vm4, 1.0, %v1517_v55 }
 0x295   : > { %1247 = vmatprep.subr.mxu1 %v1517_v55  ;;  %v530_v48 = vsub.f32 %v514_v47, %v1965_v46  ;;  %vm461_vm5 = vcmp.eq.s32.totalorder %v1681_v56, %v1699_v0  ;;  %vm497_vm6 = vcmp.eq.s32.totalorder %v1681_v56, %v1701_v1  ;;  %1213 = vmatpush3.msra.mxu0 %v531_v42 }
 0x296   : > { %1248 = vmatpush3.msra.mxu1 %v653_v44  ;;  %v652_v60 = vsub.f32 %v636_v52, %v1965_v46  ;;  %v1980_v61 = vsel %vm461_vm5, 1.0, %v1517_v55  ;;  %v513_v62 = vsel %vm497_vm6, 1.0, %v1517_v55  ;;  %vm619_vm7 = vcmp.eq.s32.totalorder %v1681_v56, %v1708_v4  ;;  %1214 = vmatprep.subr.mxu0 %v1517_v55  ;;  %v1997_v4 = vld [vmem:[%s2119_s5] sm:$0xff] }
 0x297   : > { %1249 = vmatprep.subr.mxu1 %v1517_v55  ;;  %v529_v0 = vsub.f32 %v513_v62, %v1980_v61  ;;  %v635_v1 = vsel %vm619_vm7, 1.0, %v1517_v55  ;;  %vm755_vm8 = vcmp.eq.s32.totalorder %v1697_v63, %v1706_v3  ;;  %vm754_vm9 = vcmp.eq.s32.totalorder %v1704_v2, %v1706_v3  ;;  %1215 = vmatpush3.msra.mxu0 %v530_v48 }
 0x298   : > { %1250 = vmatpush3.msra.mxu1 %v652_v60  ;;  %v651_v9 = vsub.f32 %v635_v1, %v1980_v61  ;;  %v771_v12 = vsel %vm755_vm8, 1.0, %v1517_v55  ;;  %v788_v15 = vsub.f32 %v1852_v51, %v1726_v8  ;;  %1216 = vmatprep.subr.mxu0 %v1517_v55  ;;  %vm753_vm10 = vcmp.eq.s32.totalorder %v1711_v5, %v1706_v3 }
 0x299   : > { %1251 = vmatprep.subr.mxu1 %v1517_v55  ;;  %1217 = vmatpush3.msra.mxu0 %v529_v0  ;;  %v770_v63 = vsel %vm754_vm9, 1.0, %v1517_v55  ;;  %v787_v2 = vsub.f32 %v771_v12, %v1737_v13  ;;  %vm752_vm11 = vcmp.eq.s32.totalorder %v1714_v6, %v1706_v3  ;;  %v769_v8 = vsel %vm753_vm10, 1.0, %v1517_v55 }
 0x29a   : > { %1252 = vmatpush3.msra.mxu1 %v651_v9  ;;  %1219 = vmatmul.mubr.f32.vlgmr.msra.gmra.mxu0 %v1997_v4  ;;  %v786_v5 = vsub.f32 %v770_v63, %v1752_v18  ;;  %vm751_vm12 = vcmp.eq.s32.totalorder %v1723_v7, %v1706_v3  ;;  %v768_v13 = vsel %vm752_vm11, 1.0, %v1517_v55  ;;  %v785_v6 = vsub.f32 %v769_v8, %v1773_v25 }
 0x29b   : > { %1254 = vmatmul.mubr.f32.vlgmr.msra.gmra.mxu1 %v1997_v4  ;;  %1256 = vmatprep.subr.mxu0 %v1517_v55  ;;  %vm750_vm14 = vcmp.eq.s32.totalorder %v1732_v10, %v1706_v3  ;;  %v767_v51 = vsel %vm751_vm12, 1.0, %v1517_v55  ;;  %v784_v18 = vsub.f32 %v768_v13, %v1788_v30  ;;  %vm748_vm15 = vcmp.eq.s32.totalorder %v1843_v49, %v1706_v3 }
 0x29c   : > { %1288 = vmatprep.mubr.msk.f32.mxu0 %vm1518_vm3, %v1517_v55  ;;  %1257 = vmatpush3.msra.mxu0 %v788_v15  ;;  %vm749_vm3 = vcmp.eq.s32.totalorder %v1740_v14, %v1706_v3  ;;  %v766_v7 = vsel %vm750_vm14, 1.0, %v1517_v55  ;;  %v783_v25 = vsub.f32 %v767_v51, %v1803_v35  ;;  %vm747_vm13 = vcmp.eq.s32.totalorder %v1846_v50, %v1706_v3 }
 0x29d   : > { %1258 = vmatprep.subr.mxu0 %v1517_v55  ;;  %v765_v10 = vsel %vm749_vm3, 1.0, %v1517_v55  ;;  %v782_v30 = vsub.f32 %v766_v7, %v1818_v40  ;;  %v764_v14 = vsel %vm748_vm15, 1.0, %v1517_v55  ;;  %vm746_vm0 = vcmp.eq.s32.totalorder %v1856_v53, %v1706_v3 }
 0x29e   : > { %1259 = vmatpush3.msra.mxu0 %v787_v2  ;;  %v781_v35 = vsub.f32 %v765_v10, %v1833_v45  ;;  %v763_v49 = vsel %vm747_vm13, 1.0, %v1517_v55  ;;  %v780_v40 = vsub.f32 %v764_v14, %v1873_v59  ;;  %vm745_vm1 = vcmp.eq.s32.totalorder %v1859_v57, %v1706_v3 }
 0x29f   : > { %1260 = vmatprep.subr.mxu0 %v1517_v55  ;;  %v762_v50 = vsel %vm746_vm0, 1.0, %v1517_v55  ;;  %v779_v45 = vsub.f32 %v763_v49, %v1884_v11  ;;  %vm744_vm2 = vcmp.eq.s32.totalorder %v1870_v58, %v1706_v3  ;;  %v761_v53 = vsel %vm745_vm1, 1.0, %v1517_v55 }
 0x2a0   : > { %1261 = vmatpush3.msra.mxu0 %v786_v5  ;;  %v778_v59 = vsub.f32 %v762_v50, %v1898_v17  ;;  %vm743_vm4 = vcmp.eq.s32.totalorder %v1908_v22, %v1706_v3  ;;  %v760_v57 = vsel %vm744_vm2, 1.0, %v1517_v55  ;;  %v777_v11 = vsub.f32 %v761_v53, %v1920_v26 }
 0x2a1   : > { %1262 = vmatprep.subr.mxu0 %v1517_v55  ;;  %vm742_vm5 = vcmp.eq.s32.totalorder %v1930_v32, %v1706_v3  ;;  %v759_v58 = vsel %vm743_vm4, 1.0, %v1517_v55  ;;  %v776_v16 = vsub.f32 %v760_v57, %v1934_v33  ;;  %vm741_vm6 = vcmp.eq.s32.totalorder %v1681_v56, %v1706_v3 }
 0x2a2   : > { %1263 = vmatpush3.msra.mxu0 %v785_v6  ;;  %v758_v17 = vsel %vm742_vm5, 1.0, %v1517_v55  ;;  %v775_v19 = vsub.f32 %v759_v58, %v1946_v37  ;;  %v757_v20 = vsel %vm741_vm6, 1.0, %v1517_v55  ;;  %vm956_vm12 = vcmask 1040384  }
 0x2a3   : > { %1264 = vmatprep.subr.mxu0 %v1517_v55  ;;  %v774_v21 = vsub.f32 %v758_v17, %v1965_v46  ;;  %v773_v22 = vsub.f32 %v757_v20, %v1980_v61 }
 0x2a4   : > { %1265 = vmatpush3.msra.mxu0 %v784_v18 }
 0x2a5   : > { %1266 = vmatprep.subr.mxu0 %v1517_v55 }
 0x2a6   : > { %1267 = vmatpush3.msra.mxu0 %v783_v25 }
 0x2a7   : > { %1268 = vmatprep.subr.mxu0 %v1517_v55 }
 0x2a8   : > { %1269 = vmatpush3.msra.mxu0 %v782_v30 }
 0x2a9   : > { %1270 = vmatprep.subr.mxu0 %v1517_v55 }
 0x2aa   : > { %1271 = vmatpush3.msra.mxu0 %v781_v35 }
 0x2ab   : > { %1272 = vmatprep.subr.mxu0 %v1517_v55 }
 0x2ac   : > { %1273 = vmatpush3.msra.mxu0 %v780_v40 }
 0x2ad   : > { %1274 = vmatprep.subr.mxu0 %v1517_v55 }
 0x2ae   : > { %1275 = vmatpush3.msra.mxu0 %v779_v45 }
 0x2af   : > { %1276 = vmatprep.subr.mxu0 %v1517_v55 }
 0x2b0   : > { %1277 = vmatpush3.msra.mxu0 %v778_v59 }
 0x2b1   : > { %1278 = vmatprep.subr.mxu0 %v1517_v55 }
 0x2b2   : > { %1279 = vmatpush3.msra.mxu0 %v777_v11 }
 0x2b3   : > { %1280 = vmatprep.subr.mxu0 %v1517_v55 }
 0x2b4   : > { %1281 = vmatpush3.msra.mxu0 %v776_v16 }
 0x2b5   : > { %1282 = vmatprep.subr.mxu0 %v1517_v55 }
 0x2b6   : > { %1283 = vmatpush3.msra.mxu0 %v775_v19 }
 0x2b7   : > { %1284 = vmatprep.subr.mxu0 %v1517_v55 }
 0x2b8   : > { %1285 = vmatpush3.msra.mxu0 %v774_v21 }
 0x2b9   : > { %1286 = vmatprep.subr.mxu0 %v1517_v55 }
 0x2ba   : > { %1287 = vmatpush3.msra.mxu0 %v773_v22 }
 0x2bb   : > { %1289 = vmatmul.mubr.f32.vlgmr.msra.gmra.mxu0 %v1997_v4 }
 0x35a   : > { %v611_v56 = vpop.f32.mrf.mxu0 }
 0x35b   : > { %v733_v3 = vpop.f32.mrf.mxu1  ;;  %v859_v23 = vmul.f32 %v611_v56, %v611_v56 }
 0x35c   : > { %v869_v24 = vmul.f32 %v733_v3, %v733_v3  ;;  %v1220_v26 = vpop.f32.mrf.mxu0  ;;  %v879_v33 = vmul.f32 %v733_v3, %v611_v56 }
 0x35d   : > { %v1255_v27 = vpop.f32.mrf.mxu1  ;;  %v860_v28 = vrot.slane %v859_v23, 4 }
 0x35e   : > { %v870_v29 = vrot.slane %v869_v24, 4  ;;  %v880_v38 = vrot.slane %v879_v33, 4 }
 0x35f   : > { %v861_v31 = vadd.f32 %v860_v28, %v859_v23 }
 0x360   : > { %v871_v34 = vadd.f32 %v870_v29, %v869_v24  ;;  %v881_v42 = vadd.f32 %v880_v38, %v879_v33 }
 0x361   : > { %v862_v32 = vrot.slane %v861_v31, 2 }
 0x362   : > { %v872_v39 = vrot.slane %v871_v34, 2  ;;  %v882_v44 = vrot.slane %v881_v42, 2 }
 0x363   : > { %v863_v36 = vadd.f32 %v862_v32, %v861_v31 }
 0x364   : > { %v873_v43 = vadd.f32 %v872_v39, %v871_v34  ;;  %v883_v47 = vadd.f32 %v882_v44, %v881_v42 }
 0x365   : > { %v864_v37 = vrot.slane %v863_v36, 1 }
 0x366   : > { %v874_v46 = vrot.slane %v873_v43, 1  ;;  %v884_v52 = vrot.slane %v883_v47, 1 }
 0x367   : > { %v865_v55 = vadd.f32 %v864_v37, %v863_v36 }
 0x368   : > { %v875_v48 = vadd.f32 %v874_v46, %v873_v43  ;;  %v885_v0 = vadd.f32 %v884_v52, %v883_v47  ;;  %v951_v52 = vstv %s1076_s22 }
 0x369   : > { %v866_v41 = vadd.f32 1e-06, %v865_v55 }
 0x36a   : > { %v876_v60 = vadd.f32 1e-06, %v875_v48  ;;  %v949_v48 = vand.u32 127, %v440_v54 }
 0x36b   : > { %1375 = vrsqrt.f32 %v866_v41 }
 0x36c   : > { %1377 = vrsqrt.f32 %v876_v60 }
 0x378   : > { %v1376_v61 = vpop.eup %1375 }
 0x379   : > { %v868_v62 = vmul.f32 %v1376_v61, %v1376_v61  ;;  %v886_v10 = vmul.f32 %v1376_v61, %v885_v0  ;;  %v1378_v35 = vpop.eup %1377 }
 0x37a   : > { %v878_v31 = vmul.f32 %v1378_v35, %v876_v60 }
 0x37b   : > { %v898_v1 = vmul.f32 %v885_v0, %v868_v62  ;;  %v855_v9 = vpop.f32.mrf.mxu0  ;;  %v887_v50 = vmul.f32 %v1378_v35, %v886_v10 }
 0x37c   : > { %v902_v4 = vmul.f32 %v855_v9, %v855_v9  ;;  %v912_v12 = vmul.f32 %v855_v9, %v611_v56 }
 0x37d   : > { %v899_v15 = vmul.f32 %v898_v1, %v611_v56  ;;  %v1290_v63 = vpop.f32.mrf.mxu0  ;;  %v888_v57 = vmul.f32 %v887_v50, %v887_v50 }
 0x37e   : > { %v903_v2 = vrot.slane %v902_v4, 4  ;;  %v913_v8 = vrot.slane %v912_v12, 4 }
 0x37f   : > { %v900_v5 = vsub.f32 %v733_v3, %v899_v15  ;;  %v889_v16 = vsub.f32 1.0, %v888_v57 }
 0x380   : > { %v904_v13 = vadd.f32 %v903_v2, %v902_v4  ;;  %v914_v6 = vadd.f32 %v913_v8, %v912_v12 }
 0x381   : > { %v890_v17 = vmax.f32 %v889_v16, 0.0 }
 0x382   : > { %v905_v51 = vrot.slane %v904_v13, 2  ;;  %v915_v18 = vrot.slane %v914_v6, 2 }
 0x383   : > { %vm893_vm7 = vcmp.eq.f32.partialorder %v890_v17, inf  ;;  %v896_v29 = vand.u32 2147483648, %v890_v17  ;;  %vm895_vm8 = vcmp.eq.f32.partialorder %v890_v17, 0.0 }
 0x384   : > { %v906_v7 = vadd.f32 %v905_v51, %v904_v13  ;;  %v916_v25 = vadd.f32 %v915_v18, %v914_v6 }
 0x386   : > { %v907_v30 = vrot.slane %v906_v7, 1  ;;  %v917_v14 = vrot.slane %v916_v25, 1 }
 0x388   : > { %v908_v49 = vadd.f32 %v907_v30, %v906_v7  ;;  %v918_v40 = vadd.f32 %v917_v14, %v916_v25 }
 0x38a   : > { %v909_v45 = vadd.f32 1e-06, %v908_v49  ;;  %v931_v53 = vmul.f32 %v918_v40, %v868_v62  ;;  %v919_v19 = vmul.f32 %v1376_v61, %v918_v40  ;;  %v952_v62 = vadd.s32 %v951_v52, %v949_v48 }
 0x38c   : > { %1379 = vrsqrt.f32 %v909_v45  ;;  %v932_v59 = vmul.f32 %v931_v53, %v611_v56  ;;  %vm953_vm11 = vcmp.lt.s32.totalorder %v952_v62, 252 }
 0x38d   : > { %1381 = vrsqrt.f32 %v890_v17 }
 0x38e   : > { %v933_v11 = vsub.f32 %v855_v9, %v932_v59 }
 0x390   : > { %v935_v58 = vmul.f32 %v933_v11, %v900_v5 }
 0x392   : > { %v936_v37 = vrot.slane %v935_v58, 4 }
 0x394   : > { %v937_v41 = vadd.f32 %v936_v37, %v935_v58 }
 0x396   : > { %v938_v44 = vrot.slane %v937_v41, 2 }
 0x398   : > { %v939_v46 = vadd.f32 %v938_v44, %v937_v41 }
 0x399   : > { %v1380_v20 = vpop.eup %1379 }
 0x39a   : > { %v920_v21 = vmul.f32 %v1380_v20, %v919_v19  ;;  %v1382_v24 = vpop.eup %1381  ;;  %v911_v34 = vmul.f32 %v1380_v20, %v909_v45  ;;  %v940_v47 = vrot.slane %v939_v46, 1 }
 0x39b   : > { %v892_v26 = vmul.f32 %v1382_v24, %v890_v17 }
 0x39c   : > { %v921_v22 = vmul.f32 %v920_v21, %v920_v21  ;;  %v941_v60 = vadd.f32 %v940_v47, %v939_v46 }
 0x39d   : > { %v894_v27 = vsel %vm893_vm7, %v890_v17, %v892_v26 }
 0x39e   : > { %v922_v3 = vsub.f32 1.0, %v921_v22  ;;  %v897_v32 = vsel %vm895_vm8, %v896_v29, %v894_v27 }
 0x39f   : > { %v901_v39 = vmul.f32 %v897_v32, %v878_v31 }
 0x3a0   : > { %v923_v23 = vmax.f32 %v922_v3, 0.0 }
 0x3a2   : > { %1383 = vrsqrt.f32 %v923_v23  ;;  %vm926_vm9 = vcmp.eq.f32.partialorder %v923_v23, inf  ;;  %v929_v33 = vand.u32 2147483648, %v923_v23  ;;  %vm928_vm10 = vcmp.eq.f32.partialorder %v923_v23, 0.0 }
 0x3af   : > { %v1384_v28 = vpop.eup %1383 }
 0x3b0   : > { %v925_v56 = vmul.f32 %v1384_v28, %v923_v23 }
 0x3b2   : > { %v927_v36 = vsel %vm926_vm9, %v923_v23, %v925_v56 }
 0x3b3   : > { %v930_v38 = vsel %vm928_vm10, %v929_v33, %v927_v36 }
 0x3b4   : > { %v934_v55 = vmul.f32 %v930_v38, %v911_v34 }
 0x3b6   : > { %v942_v42 = vmul.f32 %v934_v55, %v901_v39 }
 0x3b8   : > { %v943_v43 = vadd.f32 1e-06, %v942_v42 }
 0x3ba   : > { %1385 = vrcp.f32 %v943_v43 }
 0x3c7   : > { %v1386_v61 = vpop.eup %1385 }
 0x3c8   : > { %v945_v0 = vmul.f32 %v1386_v61, %v941_v60 }
 0x3ca   : > { %v946_v1 = vadd.f32 1.0, %v945_v0 }
 0x3cc   : > { %v947_v9 = vmul.f32 %v946_v1, %v946_v1 }
 0x3ce   : > { %v954_v4 = vsel %vm953_vm11, %v947_v9, 0.0 }
 0x3cf   : > { %v957_v12 = vsel %vm956_vm12, %v954_v4, 0.0 }
 0x3d0   : > { %958 = vadd.xlane.f32.xlu0 %v957_v12 }
 0x459   : > { %v959_v54 = vpop.xlane.xlu0 %958 }
 0x45a   : > { %v960_v15 = vrot.slane %v959_v54, 4 }
 0x45c   : > { %v961_v63 = vadd.f32 %v960_v15, %v959_v54 }
 0x45e   : > { %v962_v2 = vrot.slane %v961_v63, 2 }
 0x460   : > { %v963_v8 = vadd.f32 %v962_v2, %v961_v63 }
 0x462   : > { %v964_v5 = vrot.slane %v963_v8, 1 }
 0x464   : > { %v965_v13 = vadd.f32 %v964_v5, %v963_v8 }
 0x466   : > { %1293 = vpush %v965_v13 }
 0x497   : > { %s1294_s27 = spop %1293 }
 0x498   : > { %s967_s30 = smul.f32 0.003968254, %s1294_s27 }
 0x49a   : > { %s968_s8 = sadd.f32 %s967_s30, %s955_s14 }
 0x49c   : > { %970 = sst [smem:[#allocation8]] %s968_s8 }
 0x49d   : > { %1304 = dma.smem_to_hbm (%p1320_p6), %s1520_s29, 16, %s2121_s7, [#allocation9]  }
 0x49e   : > { %1486 = dma.done.wait (%p1320_p6), [#allocation4], 16  }
 0x49f   : > { %1488 = vsyncadd (%p1320_p6), [#allocation4], 4294967280 }
 0x4a0   : > { %1490 = dma.done.wait (%p1320_p6), [#allocation9], 16  }
 0x4a1   : > { %1492 = vsyncadd (%p1320_p6), [#allocation9], 4294967280 }
 0x4a2   : > { %1003 = sfence }
 0x4a3 PF: > { %p21_p8 = scmp.ge.s32.totalorder %s1606_s11, 4   ;;  %s2134_s24 = smov %s1499_s25 }
 0x4a4   : > { %s2135_s25 = smov %s1503_s26  ;;  %s2136_s26 = smov %s1623_s19 }
 0x4a5   : > { %s2137_s27 = smov %s1606_s11  ;;  %23 = sbr.rel (!%p21_p8) target bundleno = 6 (0x6), region = 105 }
 0x4aa   :  { %1009 = vsyncpa [#allocation3], 1 }
 0x4ab   :  { %1011 = vsyncpa [#allocation3 + $0x1], 1 }
 0x4ac   :  { %1012 = vsyncpa [#allocation6], 1 }
 0x4ad   :  { %1014 = vsyncpa [#allocation6 + $0x1], 1 }
 0x4ae   :  { %1015 = vsyncpa [#allocation4], 1 }
 0x4af   :  { %1017 = vsyncpa [#allocation4 + $0x1], 1 }
 0x4b0   :  { %1018 = vsyncpa [#allocation9], 1 }

</bundles_post_ra>
